<compile_context>
chip_gen: v5e
topology: v5e:2x2
jax: 0.10.0
libtpu: 0.0.40
codegen_flags: <defaults>
</compile_context>

<pallas_src>
import math

import jax
import jax.numpy as jnp
from jax.experimental import pallas as pl
from jax.experimental.pallas import tpu as pltpu


def _round_up(v: int, m: int) -> int:
    return (v + m - 1) // m * m


def _cdiv(a: int, b: int) -> int:
    return (a + b - 1) // b


def _vmem_tile_bytes(shape, dtype) -> int:
    """VMEM footprint of one buffer, including sublane/lane layout padding."""
    itemsize = jnp.dtype(dtype).itemsize
    sub = max(8, 32 // itemsize)                 # 8 (f32) / 16 (bf16) / 32 (int8)
    lanes = _round_up(int(shape[-1]), 128)
    rows = _round_up(int(shape[-2]), sub) if len(shape) >= 2 else 1
    lead = 1
    for d in shape[:-2]:
        lead *= int(d)
    return lead * rows * lanes * itemsize


def _chip_vmem_bytes() -> int:
    try:
        return int(pltpu.get_tpu_info().vmem_capacity_bytes)
    except Exception:
        return 64 * 1024 * 1024                  # conservative (v7x per-TensorCore)


# ----------------------------------------------------------------------------
# Kernels
# ----------------------------------------------------------------------------
def _linear_lora_kernel(x_ref, w_ref, b_ref, a_ref, c_ref, o_ref):
    x = x_ref[...]                                                         # (TM, IN)
    acc = jnp.dot(x, w_ref[...], preferred_element_type=jnp.float32)      # (TM, TN)
    z = jnp.dot(x, a_ref[...], preferred_element_type=jnp.float32)        # (TM, R)
    acc = acc + jnp.dot(z.astype(c_ref.dtype), c_ref[...],
                        preferred_element_type=jnp.float32)               # (TM, TN)
    o_ref[...] = (acc + b_ref[...]).astype(o_ref.dtype)


def _linear_merged_kernel(x_ref, w_ref, b_ref, o_ref):
    acc = jnp.dot(x_ref[...], w_ref[...], preferred_element_type=jnp.float32)
    o_ref[...] = (acc + b_ref[...]).astype(o_ref.dtype)


# ----------------------------------------------------------------------------
# One-time weight preprocessing (hoisted out of the per-call path)
# ----------------------------------------------------------------------------
def prepare_weights(w_pre, b_pre, u, a, b, *, r, alpha,
                    compute_dtype=jnp.float32, merge_delta=False, tile_n=512):
    assert r > 0, "LoRALayer r == 0 branch not implemented"
    out_f, in_f = w_pre.shape
    assert u.shape == (in_f, in_f)
    assert in_f == out_f, "torch r>0 forward requires in_features == out_features"

    scale = jnp.float32(float(alpha) / float(r))
    u32 = u.astype(jnp.float32)
    a_eff_t = (a.astype(jnp.float32) @ u32).T                # (IN, R)  = (A@U)^T
    c_eff = (b.astype(jnp.float32).T @ u32) * scale          # (R, OUT) = B^T@U * a/r
    w_pre_t = w_pre.astype(jnp.float32).T                    # (IN, OUT), no in-kernel .T
    bias = (jnp.zeros((out_f,), jnp.float32) if b_pre is None
            else b_pre.astype(jnp.float32))

    # Lane-dense OUT: pad to a multiple of 128, N tile chosen to divide it evenly.
    out_pad = _round_up(out_f, 128)
    n_nt = _cdiv(out_pad, tile_n)
    tn = _round_up(_cdiv(out_pad, n_nt), 128)
    out_pad = n_nt * tn

    def pad_cols(mat):
        return jnp.pad(mat, ((0, 0), (0, out_pad - mat.shape[1])))

    w_pre_t = pad_cols(w_pre_t)
    c_eff = pad_cols(c_eff)
    bias = jnp.pad(bias, (0, out_pad - out_f)).reshape(1, out_pad)   # kept f32

    if merge_delta:
        w_eff = (w_pre_t + a_eff_t @ c_eff).astype(compute_dtype)
        ops = (w_eff, bias)
    else:
        ops = (w_pre_t.astype(compute_dtype), bias,
               a_eff_t.astype(compute_dtype), c_eff.astype(compute_dtype))

    meta = dict(in_f=in_f, out_f=out_f, out_pad=out_pad, tn=tn, r=r,
                merge_delta=merge_delta, compute_dtype=compute_dtype)
    return ops, meta


# ----------------------------------------------------------------------------
# Per-call application
# ----------------------------------------------------------------------------
def linear_lora_apply(x, prepared, *, tile_m=256):
    ops, meta = prepared
    in_f, out_f = meta["in_f"], meta["out_f"]
    out_pad, tn = meta["out_pad"], meta["tn"]
    r_dim, merged = meta["r"], meta["merge_delta"]
    cdt = meta["compute_dtype"]

    orig_shape = x.shape
    assert orig_shape[-1] == in_f
    out_dtype = x.dtype
    m = int(math.prod(orig_shape[:-1])) if orig_shape[:-1] else 1

    x2 = x.reshape(m, in_f).astype(cdt)

    # M tile: close to tile_m, last tile nearly full (minimal pad waste).
    n_mt = max(1, _cdiv(m, tile_m))
    tm = _round_up(_cdiv(m, n_mt), 8)
    m_pad = _round_up(m, tm)
    if m_pad != m:
        x2 = jnp.pad(x2, ((0, m_pad - m), (0, 0)))

    n_nt = out_pad // tn
    grid = (m_pad // tm, n_nt)

    # Constant-index-map operands only need one VMEM buffer.
    res_mode = dict(pipeline_mode=pl.Buffered(1)) if n_nt == 1 else {}

    x_spec = pl.BlockSpec((tm, in_f), lambda i, j: (i, 0))
    w_spec = pl.BlockSpec((in_f, tn), lambda i, j: (0, j), **res_mode)
    b_spec = pl.BlockSpec((1, tn), lambda i, j: (0, j), **res_mode)
    out_spec = pl.BlockSpec((tm, tn), lambda i, j: (i, j))

    if merged:
        kernel = _linear_merged_kernel
        in_specs = [x_spec, w_spec, b_spec]
        flops = 2 * m_pad * in_f * out_pad
    else:
        kernel = _linear_lora_kernel
        a_spec = pl.BlockSpec((in_f, r_dim), lambda i, j: (0, 0),
                              pipeline_mode=pl.Buffered(1))
        c_spec = pl.BlockSpec((r_dim, tn), lambda i, j: (0, j), **res_mode)
        in_specs = [x_spec, w_spec, b_spec, a_spec, c_spec]
        flops = 2 * m_pad * (in_f * out_pad + n_nt * in_f * r_dim + r_dim * out_pad)

    # VMEM budget (layout-padding aware), clamped to chip capacity minus headroom.
    w_bufs = 1 if n_nt == 1 else 2
    est = 2 * _vmem_tile_bytes((tm, in_f), cdt)                 # x, double-buffered
    est += w_bufs * _vmem_tile_bytes((in_f, tn), cdt)           # W
    est += w_bufs * _vmem_tile_bytes((1, tn), jnp.float32)      # bias
    if not merged:
        est += _vmem_tile_bytes((in_f, r_dim), cdt)             # (A@U)^T, single buf
        est += w_bufs * _vmem_tile_bytes((r_dim, tn), cdt)      # scaled B^T@U
    est += 2 * _vmem_tile_bytes((tm, tn), out_dtype)            # out, double-buffered
    est += 4 << 20                                              # compiler scratch headroom
    vmem_cap = _chip_vmem_bytes() - (8 << 20)
    vmem_limit = int(max(16 << 20, min(est, vmem_cap)))

    itemsize = jnp.dtype(cdt).itemsize
    w_reads = 1 if n_nt == 1 else grid[0]
    bytes_accessed = int(m_pad * in_f * itemsize
                         + w_reads * in_f * out_pad * itemsize
                         + m_pad * out_pad * jnp.dtype(out_dtype).itemsize)

    out = pl.pallas_call(
        kernel,
        out_shape=jax.ShapeDtypeStruct((m_pad, out_pad), out_dtype),
        grid=grid,
        in_specs=in_specs,
        out_specs=out_spec,
        compiler_params=pltpu.CompilerParams(
            dimension_semantics=("parallel", "parallel"),
            vmem_limit_bytes=vmem_limit,
        ),
        cost_estimate=pl.CostEstimate(flops=int(flops), transcendentals=0,
                                      bytes_accessed=bytes_accessed),
    )(x2, *ops)

    out = out[:m, :out_f]
    return out.reshape(*orig_shape[:-1], out_f)


# ----------------------------------------------------------------------------
if __name__ == "__main__":
    # Small shapes implied by the module (used inside MultiheadAttention):
    # in_features == out_features, r > 0 LoRA rank.
    BATCH, SEQ = 2, 8
    IN = OUT = 32
    R, ALPHA = 8, 16

    key = jax.random.PRNGKey(0)
    kx, kw, kb, ka, kB = jax.random.split(key, 5)

    x = jax.random.normal(kx, (BATCH, SEQ, IN), dtype=jnp.float32)

    # Pre weights (provided externally in the torch ctor -> deterministic random here).
    w_pre = jax.random.normal(kw, (OUT, IN), dtype=jnp.float32) * 0.1
    b_pre = jax.random.normal(kb, (OUT,), dtype=jnp.float32) * 0.1

    # LoRALayer params: U is identity at construction (randomize()/qr() never called),
    # A ~ kaiming-uniform, B zeros per reset_parameters(); use small random B so the
    # LoRA path contributes nonzero values and is actually exercised.
    u = jnp.eye(IN, dtype=jnp.float32)
    bound_a = 1.0 / math.sqrt(IN)
    A = jax.random.uniform(ka, (R, IN), minval=-bound_a, maxval=bound_a, dtype=jnp.float32)
    B = jax.random.normal(kB, (OUT, R), dtype=jnp.float32) * 0.05

    # Pure-JAX reference of the exact torch forward semantics.
    def ref(xv):
        pre = xv @ w_pre.T + b_pre
        xU = xv @ u.T
        xUW = xU @ (B @ A).T
        xUWUh = xUW @ u
        return pre + xUWUh * ALPHA / R

    expected = ref(x)

    # 1) f32 low-rank path (matches the torch reference numerics tightly).
    prep = prepare_weights(w_pre, b_pre, u, A, B, r=R, alpha=ALPHA,
                           compute_dtype=jnp.float32)
    out = jax.block_until_ready(linear_lora_apply(x, prep))
    assert out.shape == (BATCH, SEQ, OUT), out.shape
    assert jnp.allclose(out, expected, atol=1e-4, rtol=1e-4), float(
        jnp.max(jnp.abs(out - expected)))

    # 2) Delta merged into the dense weight (static-weight / inference fast path).
    prep_m = prepare_weights(w_pre, b_pre, u, A, B, r=R, alpha=ALPHA,
                             compute_dtype=jnp.float32, merge_delta=True)
    out_m = jax.block_until_ready(linear_lora_apply(x, prep_m))
    assert jnp.allclose(out_m, expected, atol=1e-3, rtol=1e-3), float(
        jnp.max(jnp.abs(out_m - expected)))

    # 3) bf16 MXU path (f32 accumulation / bias add) -- looser tolerance by design.
    prep_bf = prepare_weights(w_pre, b_pre, u, A, B, r=R, alpha=ALPHA,
                              compute_dtype=jnp.bfloat16)
    out_bf = jax.block_until_ready(linear_lora_apply(x, prep_bf))
    assert jnp.allclose(out_bf, expected, atol=5e-2, rtol=5e-2), float(
        jnp.max(jnp.abs(out_bf - expected)))

    print("KERNEL_OK")
</pallas_src>

<mosaic_0001>
module attributes {stable_mosaic.version = 11 : i64} {
  func.func @_linear_lora_kernel(%arg0: i32, %arg1: i32, %arg2: memref<16x32xf32, #tpu.memory_space<vmem>>, %arg3: memref<32x128xf32, #tpu.memory_space<vmem>>, %arg4: memref<1x128xf32, #tpu.memory_space<vmem>>, %arg5: memref<32x8xf32, #tpu.memory_space<vmem>>, %arg6: memref<8x128xf32, #tpu.memory_space<vmem>>, %arg7: memref<16x128xf32, #tpu.memory_space<vmem>>) attributes {dimension_semantics = [#tpu.dimension_semantics<parallel>, #tpu.dimension_semantics<parallel>], iteration_bounds = array<i64: 1, 1>, scalar_prefetch = 0 : i64, scratch_operands = 0 : i64, tpu.core_type = #tpu.core_type<tc>, window_params = [{transform_indices = @transform_0, window_bounds = array<i64: 16, 32>}, {pipeline_mode = #tpu.pipeline_mode<synchronous>, transform_indices = @transform_1, window_bounds = array<i64: 32, 128>}, {pipeline_mode = #tpu.pipeline_mode<synchronous>, transform_indices = @transform_2, window_bounds = array<i64: 1, 128>}, {pipeline_mode = #tpu.pipeline_mode<synchronous>, transform_indices = @transform_3, window_bounds = array<i64: 32, 8>}, {pipeline_mode = #tpu.pipeline_mode<synchronous>, transform_indices = @transform_4, window_bounds = array<i64: 8, 128>}, {transform_indices = @transform_5, window_bounds = array<i64: 16, 128>}]} {
    %c0 = arith.constant 0 : index
    %c0_0 = arith.constant 0 : index
    %0 = vector.load %arg2[%c0, %c0_0] : memref<16x32xf32, #tpu.memory_space<vmem>>, vector<16x32xf32>
    %c0_1 = arith.constant 0 : index
    %c0_2 = arith.constant 0 : index
    %1 = vector.load %arg3[%c0_1, %c0_2] : memref<32x128xf32, #tpu.memory_space<vmem>>, vector<32x128xf32>
    %cst = arith.constant dense<0.000000e+00> : vector<16x128xf32>
    %2 = tpu.matmul %0, %1, %cst {dimension_numbers = #tpu.dot_dimension_numbers<[1], [0], [0], [1], [0, 0, 1, 1], [], []>} : vector<16x32xf32>, vector<32x128xf32>, vector<16x128xf32> -> vector<16x128xf32>
    %c0_3 = arith.constant 0 : index
    %c0_4 = arith.constant 0 : index
    %3 = vector.load %arg5[%c0_3, %c0_4] : memref<32x8xf32, #tpu.memory_space<vmem>>, vector<32x8xf32>
    %cst_5 = arith.constant dense<0.000000e+00> : vector<16x8xf32>
    %4 = tpu.matmul %0, %3, %cst_5 {dimension_numbers = #tpu.dot_dimension_numbers<[1], [0], [0], [1], [0, 0, 1, 1], [], []>} : vector<16x32xf32>, vector<32x8xf32>, vector<16x8xf32> -> vector<16x8xf32>
    %c0_6 = arith.constant 0 : index
    %c0_7 = arith.constant 0 : index
    %5 = vector.load %arg6[%c0_6, %c0_7] : memref<8x128xf32, #tpu.memory_space<vmem>>, vector<8x128xf32>
    %cst_8 = arith.constant dense<0.000000e+00> : vector<16x128xf32>
    %6 = tpu.matmul %4, %5, %cst_8 {dimension_numbers = #tpu.dot_dimension_numbers<[1], [0], [0], [1], [0, 0, 1, 1], [], []>} : vector<16x8xf32>, vector<8x128xf32>, vector<16x128xf32> -> vector<16x128xf32>
    %7 = arith.addf %2, %6 : vector<16x128xf32>
    %c0_9 = arith.constant 0 : index
    %c0_10 = arith.constant 0 : index
    %8 = vector.load %arg4[%c0_9, %c0_10] : memref<1x128xf32, #tpu.memory_space<vmem>>, vector<1x128xf32>
    %9 = vector.broadcast %8 : vector<1x128xf32> to vector<16x128xf32>
    %10 = arith.addf %7, %9 : vector<16x128xf32>
    %c0_11 = arith.constant 0 : index
    %c0_12 = arith.constant 0 : index
    %11 = vector.load %arg7[%c0_11, %c0_12] : memref<16x128xf32, #tpu.memory_space<vmem>>, vector<16x128xf32>
    tpu.vector_store %arg7[%c0_11, %c0_12], %10 {strides = array<i32>} : memref<16x128xf32, #tpu.memory_space<vmem>>, vector<16x128xf32>,
    return
  }
  func.func @transform_0(%arg0: i32, %arg1: i32) -> (i32, i32) {
    %c0_i32 = arith.constant 0 : i32
    %c0_i32_0 = arith.constant 0 : i32
    return %arg0, %c0_i32 : i32, i32
  }
  func.func @transform_1(%arg0: i32, %arg1: i32) -> (i32, i32) {
    %c0_i32 = arith.constant 0 : i32
    %c0_i32_0 = arith.constant 0 : i32
    return %c0_i32, %arg1 : i32, i32
  }
  func.func @transform_2(%arg0: i32, %arg1: i32) -> (i32, i32) {
    %c0_i32 = arith.constant 0 : i32
    %c0_i32_0 = arith.constant 0 : i32
    return %c0_i32, %arg1 : i32, i32
  }
  func.func @transform_3(%arg0: i32, %arg1: i32) -> (i32, i32) {
    %c0_i32 = arith.constant 0 : i32
    %c0_i32_0 = arith.constant 0 : i32
    %c0_i32_1 = arith.constant 0 : i32
    return %c0_i32, %c0_i32_0 : i32, i32
  }
  func.func @transform_4(%arg0: i32, %arg1: i32) -> (i32, i32) {
    %c0_i32 = arith.constant 0 : i32
    %c0_i32_0 = arith.constant 0 : i32
    return %c0_i32, %arg1 : i32, i32
  }
  func.func @transform_5(%arg0: i32, %arg1: i32) -> (i32, i32) {
    %c0_i32 = arith.constant 0 : i32
    return %arg0, %arg1 : i32, i32
  }
}

</mosaic_0001>

<bundles_post_ra>
// kernel: tpu_custom_call.1
= control target key start
LH: loop header
LB: loop body
LE: loop exit
PB: predicated region body
PF: predicated region fallthrough
CT: control target
= control target key end

     0   :  { %10 = vsyncpa [#allocation3], 0  ;;  %s301_s0 = inlined_call_operand.hbm [shape: f32[16,32], index: 0, kind: input, shape index: {}]   ;;  %s302_s1 = inlined_call_operand.vmem [shape: f32[32,128], index: 1, kind: input, shape index: {}]   ;;  %s303_s2 = inlined_call_operand.vmem [shape: f32[1,128], index: 2, kind: input, shape index: {}]   ;;  %s304_s3 = inlined_call_operand.vmem [shape: f32[32,8], index: 3, kind: input, shape index: {}]   ;;  %s305_s4 = inlined_call_operand.vmem [shape: f32[8,128], index: 4, kind: input, shape index: {}]   ;;  %s306_s5 = inlined_call_operand.hbm [shape: f32[16,128], index: 5, kind: output, shape index: {}]  }
   0x1   :  { %11 = vsyncpa [#allocation4], 0  ;;  %s16_s20 = sshll.u32 %s301_s0, 4  ;;  %s225_s21 = smov [#allocation2]   ;;  %s17_s20 = int_to_ptr.hbm [resolvable:$true] %s16_s20 }
   0x2   :  { %s18_s22 = sshll.u32 %s225_s21, 4  ;;  %s226_s23 = smov 128   ;;  %s19_s22 = int_to_ptr.vmem [resolvable:$true] %s18_s22 }
   0x3   :  { %s227_s24 = smov 8  }
   0x4   :  { %24 = dma.hbm_to_vmem [thread:$0]  %s17_s20, 256, %s19_s22, [#allocation3], %s226_s23, %s226_s23, %s227_s24  }
   0x5   :  { %221 = dma.done.wait [#allocation3], 256  }
   0x6   :  { %222 = vsyncadd [#allocation3], 4294967040  ;;  %v46_v0 = vld [vmem:[%s304_s3 + $0x18] sm:$0xff]  ;;  %v45_v1 = vld [vmem:[%s304_s3 + $0x10] sm:$0xff]  ;;  %vm47_vm0 = vcmask 261120   ;;  %vm78_vm1 = vcmask 64512  }
   0x7   :  { %66 = vmatpush.msra.mxu0 %v46_v0  ;;  %164 = vmatpush.msra.mxu3 %v46_v0  ;;  %v44_v2 = vld [vmem:[%s304_s3 + $0x8] sm:$0xff]  ;;  %v42_v3 = vld [vmem:[%s302_s1 + $0x18] sm:$0xff]  ;;  %v41_v4 = vld [vmem:[%s302_s1 + $0x10] sm:$0xff]  ;;  %s145_s20 = sshll.u32 %s306_s5, 4  ;;  %s146_s20 = int_to_ptr.hbm [resolvable:$true] %s145_s20 }
   0x8   :  { %v43_v5 = vld [vmem:[%s304_s3] sm:$0xff]  ;;  %120 = vmatpush.msra.mxu2 %v42_v3  ;;  %v38_v7 = vld [vmem:[#allocation2 + $0x8] sm:$0xff] }
   0x9   :  { %67 = vmatpush.msra.mxu0 %v45_v1  ;;  %165 = vmatpush.msra.mxu3 %v45_v1  ;;  %v37_v6 = vld [vmem:[#allocation2] sm:$0xff]  ;;  %v40_v8 = vld [vmem:[%s302_s1 + $0x8] sm:$0xff] }
   0xa   :  { %121 = vmatpush.msra.mxu2 %v41_v4  ;;  %v39_v9 = vld [vmem:[%s302_s1] sm:$0xff]  ;;  %s228_s1 = smov [#allocation5]  }
   0xb   :  { %68 = vmatpush.msra.mxu0 %v44_v2  ;;  %166 = vmatpush.msra.mxu3 %v44_v2  ;;  %v77_v10 = vld [vmem:[%s305_s4] sm:$0xff]  ;;  %s143_s18 = sshll.u32 %s228_s1, 4  ;;  %s144_s18 = int_to_ptr.vmem [resolvable:$true] %s143_s18 }
   0xc   :  { %122 = vmatpush.msra.mxu2 %v40_v8  ;;  %100 = vmatpush.msra.mxu1 %v77_v10  ;;  %v172_v14 = vld [vmem:[%s303_s2] ss:$0 sm:$0xff] }
   0xd   :  { %69 = vmatpush.msra.mxu0 %v43_v5  ;;  %167 = vmatpush.msra.mxu3 %v43_v5 }
   0xe   :  { %158 = vmatmul.msk.f32.vlgmr.msra.gmra.mxu0 %vm47_vm0, %v37_v6  ;;  %159 = vmatmul.msk.f32.vlgmr.msra.gmra.mxu3 %vm47_vm0, %v38_v7 }
   0xf   :  { %123 = vmatpush.msra.mxu2 %v39_v9 }
  0x10   :  { %162 = vmatmul.msk.f32.vlgmr.msra.gmra.mxu2 %vm47_vm0, %v37_v6 }
  0x18   :  { %163 = vmatmul.msk.f32.gmra.mxu2 %vm47_vm0, %v38_v7 }
  0x8b   :  { %v71_v11 = vpop.f32.mrf.mxu0 }
  0x8c   :  { %160 = vmatmul.msk.f32.vlgmr.msra.gmra.mxu1 %vm78_vm1, %v71_v11 }
  0x91   :  { %v74_v12 = vpop.f32.mrf.mxu3 }
  0x93   :  { %v125_v13 = vpop.f32.mrf.mxu2 }
  0x94   :  { %161 = vmatmul.msk.f32.gmra.mxu1 %vm78_vm1, %v74_v12 }
  0x9b   :  { %v128_v18 = vpop.f32.mrf.mxu2 }
 0x109   :  { %v102_v15 = vpop.f32.mrf.mxu1 }
 0x10a   :  { %v126_v16 = vadd.f32 %v125_v13, %v102_v15 }
 0x10c   :  { %v135_v17 = vadd.f32 %v172_v14, %v126_v16 }
 0x10e   :  { %137 = vst [vmem:[#allocation5] sm:$0xff] %v135_v17 }
 0x111   :  { %v105_v19 = vpop.f32.mrf.mxu1 }
 0x112   :  { %v129_v20 = vadd.f32 %v128_v18, %v105_v19 }
 0x114   :  { %v136_v21 = vadd.f32 %v172_v14, %v129_v20 }
 0x116   :  { %138 = vst [vmem:[#allocation5 + $0x8] sm:$0xff] %v136_v21 }
 0x117   :  { %151 = dma.vmem_to_hbm [thread:$0]  %s144_s18, 256, %s146_s20, [#allocation4], %s226_s23, %s226_s23, %s227_s24  }
 0x118   :  { %223 = dma.done.wait [#allocation4], 256  }
 0x119   :  { %224 = vsyncadd [#allocation4], 4294967040 }
 0x11a   :  { %156 = vsyncpa [#allocation3], 1 }
 0x11b   :  { %157 = vsyncpa [#allocation4], 1 }

</bundles_post_ra>
